<compile_context>
chip_gen: v7x
topology: tpu7x:2x2x1
jax: 0.10.0
libtpu: 0.0.40
codegen_flags: <defaults>
</compile_context>

<pallas_src>
import functools

import jax
import jax.numpy as jnp
import numpy as np
from jax.experimental import pallas as pl
from jax.experimental.pallas import tpu as pltpu

# ---- fused sincos: shared Cody-Waite reduction + Cephes f32 minimax polys ----
_TWO_OVER_PI = 0.6366197723675814
# pi/2 split into three f32-exact pieces (2x the classic Cephes pi/4 split).
_PIO2_1 = 2.0 * 0.78515625
_PIO2_2 = 2.0 * 2.4187564849853515625e-4
_PIO2_3 = 2.0 * 3.77489497744594108e-8
# Valid for |x| small enough that kf stays well below 2^22 (time embeddings
# with x in [0, ~1e3] and scale ~30 are far inside this range).


def _sincos(x):
    """Return (sin(x), cos(x)) with a single shared range reduction (f32)."""
    kf = jnp.floor(x * _TWO_OVER_PI + 0.5)            # nearest multiple of pi/2
    r = ((x - kf * _PIO2_1) - kf * _PIO2_2) - kf * _PIO2_3
    r2 = r * r
    # Minimax polynomials on [-pi/4, pi/4] (Cephes single precision).
    sin_r = r + r * r2 * (-1.6666654611e-1
                          + r2 * (8.3321608736e-3 + r2 * (-1.9515295891e-4)))
    cos_r = 1.0 - 0.5 * r2 + r2 * r2 * (4.166664568298827e-2
                                        + r2 * (-1.388731625493765e-3
                                                + r2 * 2.443315711809948e-5))
    # Quadrant handling: swap-select on (q & 1), sign flip via sign-bit XOR.
    q = kf.astype(jnp.int32)                          # two's complement: ok for k<0
    swap = (q & 1) != 0                               # odd quadrant: sin <-> cos
    s_base = jnp.where(swap, cos_r, sin_r)
    c_base = jnp.where(swap, sin_r, cos_r)
    s_sign = (q & 2) << 30                            # 0x80000000 for quadrants 2,3
    c_sign = ((q + 1) & 2) << 30                      # 0x80000000 for quadrants 1,2
    sin_x = pltpu.bitcast(pltpu.bitcast(s_base, jnp.int32) ^ s_sign, jnp.float32)
    cos_x = pltpu.bitcast(pltpu.bitcast(c_base, jnp.int32) ^ c_sign, jnp.float32)
    return sin_x, cos_x


def _gfp_kernel(w_ref, x_ref, o_ref, *, half, duplicated):
    # w_ref: (1, W)  f32  frozen weights * 2*pi; W = 2*half if duplicated else half
    # x_ref: (tb, 1) f32  batch rows on sublanes
    # o_ref: (tb, 2*half)  torch layout: cols [0,half)=sin, [half,2*half)=cos
    x_proj = x_ref[...] * w_ref[...]                  # (tb, W) outer product (VPU)
    s, c = _sincos(x_proj)                            # one reduction, two short polys
    if duplicated:
        # Lanes [0, half) take sin, lanes [half, 2*half) take cos: one full store.
        lane = jax.lax.broadcasted_iota(jnp.int32, x_proj.shape, 1)
        o_ref[...] = jnp.where(lane < half, s, c).astype(o_ref.dtype)
    else:
        # half >= 128: both sub-stores start on 128-lane boundaries.
        o_ref[:, :half] = s.astype(o_ref.dtype)
        o_ref[:, half:] = c.astype(o_ref.dtype)


def _rows_per_tile(batch, lane_pad, tile_b):
    """Batch rows per grid step (sublane dimension of every block)."""
    # Double-buffered output block budget ~8 MiB -> total VMEM (out + x + w)
    # stays far under v7x's 32 MiB scoped default (and v5e/v6e limits).
    budget = 8 * 1024 * 1024
    tb = budget // (2 * 4 * lane_pad)
    tb = min(tb, 4096)                     # big tiles amortize ~0.35us/step overhead
    if tile_b is not None:
        tb = min(tb, tile_b)
    if batch >= 256:
        tb = min(tb, pl.cdiv(batch, 2))    # >=2 grid steps -> both v7x cores get work
    if batch <= 8:
        return max(1, min(tb, batch))      # block == full (tiny) batch dim
    tb = min(tb, batch)
    return max(8, (tb // 8) * 8)           # sublane-aligned


def gaussian_fourier_projection(x, w_2pi, *, tile_b=None, out_dtype=jnp.float32):
    """x: (B,) float, w_2pi: (half,) float (= W * 2*pi) -> (B, 2*half)."""
    B = x.shape[0]
    half = int(w_2pi.shape[0])
    out_cols = 2 * half
    duplicated = half < 128                # narrow embed: duplicate W along lanes

    w_row = jnp.concatenate([w_2pi, w_2pi]) if duplicated else w_2pi
    w_row = w_row.astype(jnp.float32).reshape(1, -1)
    w_cols = w_row.shape[1]
    x_col = x.astype(jnp.float32).reshape(B, 1)

    lane_pad = pl.cdiv(max(out_cols, 128), 128) * 128   # VMEM lane footprint per row
    tb = _rows_per_tile(B, lane_pad, tile_b)
    grid = (pl.cdiv(B, tb),)               # ragged last block handled by Pallas

    kernel = functools.partial(_gfp_kernel, half=half, duplicated=duplicated)
    return pl.pallas_call(
        kernel,
        out_shape=jax.ShapeDtypeStruct((B, out_cols), out_dtype),
        grid_spec=pltpu.PrefetchScalarGridSpec(
            num_scalar_prefetch=0,
            grid=grid,
            in_specs=[
                pl.BlockSpec((1, w_cols), lambda i: (0, 0)),   # weights, resident
                pl.BlockSpec((tb, 1), lambda i: (i, 0)),       # batch rows (sublanes)
            ],
            out_specs=pl.BlockSpec((tb, out_cols), lambda i: (i, 0)),  # torch layout
        ),
        compiler_params=pltpu.CompilerParams(
            dimension_semantics=("parallel",),          # shard batch tiles across TCs
            vmem_limit_bytes=32 * 1024 * 1024,          # safe on v5e/v6e/v7x
        ),
    )(w_row, x_col)


class GaussianFourierProjection:
    """Gaussian random features for encoding time steps (frozen weights)."""

    def __init__(self, embed_dim, scale=30.0, *, key):
        half = embed_dim // 2
        W = jax.random.normal(key, (half,), dtype=jnp.float32) * scale
        self.W = W                                             # frozen parameter
        # Init-time fold of the constant 2*pi into the frozen weights.
        self.w_2pi = (W * (2.0 * np.pi)).astype(jnp.float32)
        self.embed_dim = embed_dim

    def __call__(self, x, *, tile_b=None, out_dtype=jnp.float32):
        return gaussian_fourier_projection(x, self.w_2pi, tile_b=tile_b,
                                           out_dtype=out_dtype)


if __name__ == "__main__":
    key = jax.random.PRNGKey(0)
    k_w1, k_w2, k_w3, k_x1, k_x2, k_x3 = jax.random.split(key, 6)

    def check(embed_dim, batch, k_w, k_x, tile_b=None):
        gfp = GaussianFourierProjection(embed_dim, scale=30.0, key=k_w)
        x = jax.random.uniform(k_x, (batch,), dtype=jnp.float32)
        out = jax.block_until_ready(gfp(x, tile_b=tile_b))
        assert out.shape == (batch, 2 * (embed_dim // 2)), out.shape
        # Ground truth: identical f32 arguments, trig evaluated in float64.
        xp32 = (np.asarray(x, np.float32)[:, None]
                * np.asarray(gfp.w_2pi, np.float32)[None, :])
        xp64 = xp32.astype(np.float64)
        ref = np.concatenate([np.sin(xp64), np.cos(xp64)], axis=-1)
        np.testing.assert_allclose(np.asarray(out, np.float64), ref,
                                   atol=1e-5, rtol=1e-5)

    # Small config matching typical module usage (duplicated-W lane path).
    check(embed_dim=32, batch=8, k_w=k_w1, k_x=k_x1)
    # Multi-tile ragged grid (batch not a multiple of the tile).
    check(embed_dim=64, batch=300, k_w=k_w2, k_x=k_x2, tile_b=128)
    # Wide-embedding path (half >= 128: two lane-aligned sub-stores).
    check(embed_dim=256, batch=40, k_w=k_w3, k_x=k_x3)

    # TODO(synk): for toy sizes like (8, 32) this op is best fused into the
    # downstream time-MLP's first Linear rather than shipped standalone.
    print("KERNEL_OK")
</pallas_src>

<mosaic_0001>
module attributes {stable_mosaic.version = 11 : i64} {
  func.func @_gfp_kernel(%arg0: i32, %arg1: memref<1x32xf32, #tpu.memory_space<vmem>>, %arg2: memref<8x1xf32, #tpu.memory_space<vmem>>, %arg3: memref<8x32xf32, #tpu.memory_space<vmem>>) attributes {dimension_semantics = [#tpu.dimension_semantics<parallel>], iteration_bounds = array<i64: 1>, scalar_prefetch = 0 : i64, scratch_operands = 0 : i64, tpu.core_type = #tpu.core_type<tc>, window_params = [{pipeline_mode = #tpu.pipeline_mode<synchronous>, transform_indices = @transform_0, window_bounds = array<i64: 1, 32>}, {transform_indices = @transform_1, window_bounds = array<i64: 8, 1>}, {transform_indices = @transform_2, window_bounds = array<i64: 8, 32>}]} {
    %c0 = arith.constant 0 : index
    %c0_0 = arith.constant 0 : index
    %0 = vector.load %arg2[%c0, %c0_0] : memref<8x1xf32, #tpu.memory_space<vmem>>, vector<8x1xf32>
    %c0_1 = arith.constant 0 : index
    %c0_2 = arith.constant 0 : index
    %1 = vector.load %arg1[%c0_1, %c0_2] : memref<1x32xf32, #tpu.memory_space<vmem>>, vector<1x32xf32>
    %2 = vector.broadcast %0 : vector<8x1xf32> to vector<8x32xf32>
    %3 = vector.broadcast %1 : vector<1x32xf32> to vector<8x32xf32>
    %4 = arith.mulf %2, %3 : vector<8x32xf32>
    %cst = arith.constant 0.636619746 : f32
    %5 = vector.broadcast %cst : f32 to vector<8x32xf32>
    %6 = arith.mulf %4, %5 : vector<8x32xf32>
    %cst_3 = arith.constant 5.000000e-01 : f32
    %7 = vector.broadcast %cst_3 : f32 to vector<8x32xf32>
    %8 = arith.addf %6, %7 : vector<8x32xf32>
    %9 = math.floor %8 : vector<8x32xf32>
    %cst_4 = arith.constant 1.5703125 : f32
    %10 = vector.broadcast %cst_4 : f32 to vector<8x32xf32>
    %11 = arith.mulf %9, %10 : vector<8x32xf32>
    %12 = arith.subf %4, %11 : vector<8x32xf32>
    %cst_5 = arith.constant 4.83751297E-4 : f32
    %13 = vector.broadcast %cst_5 : f32 to vector<8x32xf32>
    %14 = arith.mulf %9, %13 : vector<8x32xf32>
    %15 = arith.subf %12, %14 : vector<8x32xf32>
    %cst_6 = arith.constant 7.549790e-08 : f32
    %16 = vector.broadcast %cst_6 : f32 to vector<8x32xf32>
    %17 = arith.mulf %9, %16 : vector<8x32xf32>
    %18 = arith.subf %15, %17 : vector<8x32xf32>
    %19 = arith.mulf %18, %18 : vector<8x32xf32>
    %20 = arith.mulf %18, %19 : vector<8x32xf32>
    %cst_7 = arith.constant -1.95152956E-4 : f32
    %21 = vector.broadcast %cst_7 : f32 to vector<8x32xf32>
    %22 = arith.mulf %19, %21 : vector<8x32xf32>
    %cst_8 = arith.constant 0.00833216123 : f32
    %23 = vector.broadcast %cst_8 : f32 to vector<8x32xf32>
    %24 = arith.addf %23, %22 : vector<8x32xf32>
    %25 = arith.mulf %19, %24 : vector<8x32xf32>
    %cst_9 = arith.constant -0.166666552 : f32
    %26 = vector.broadcast %cst_9 : f32 to vector<8x32xf32>
    %27 = arith.addf %26, %25 : vector<8x32xf32>
    %28 = arith.mulf %20, %27 : vector<8x32xf32>
    %29 = arith.addf %18, %28 : vector<8x32xf32>
    %cst_10 = arith.constant 5.000000e-01 : f32
    %30 = vector.broadcast %cst_10 : f32 to vector<8x32xf32>
    %31 = arith.mulf %30, %19 : vector<8x32xf32>
    %cst_11 = arith.constant 1.000000e+00 : f32
    %32 = vector.broadcast %cst_11 : f32 to vector<8x32xf32>
    %33 = arith.subf %32, %31 : vector<8x32xf32>
    %34 = arith.mulf %19, %19 : vector<8x32xf32>
    %cst_12 = arith.constant 2.44331568E-5 : f32
    %35 = vector.broadcast %cst_12 : f32 to vector<8x32xf32>
    %36 = arith.mulf %19, %35 : vector<8x32xf32>
    %cst_13 = arith.constant -0.00138873165 : f32
    %37 = vector.broadcast %cst_13 : f32 to vector<8x32xf32>
    %38 = arith.addf %37, %36 : vector<8x32xf32>
    %39 = arith.mulf %19, %38 : vector<8x32xf32>
    %cst_14 = arith.constant 0.0416666456 : f32
    %40 = vector.broadcast %cst_14 : f32 to vector<8x32xf32>
    %41 = arith.addf %40, %39 : vector<8x32xf32>
    %42 = arith.mulf %34, %41 : vector<8x32xf32>
    %43 = arith.addf %33, %42 : vector<8x32xf32>
    %44 = arith.fptosi %9 : vector<8x32xf32> to vector<8x32xi32>
    %c1_i32 = arith.constant 1 : i32
    %45 = vector.broadcast %c1_i32 : i32 to vector<8x32xi32>
    %46 = arith.andi %44, %45 : vector<8x32xi32>
    %c0_i32 = arith.constant 0 : i32
    %47 = vector.broadcast %c0_i32 : i32 to vector<8x32xi32>
    %48 = arith.cmpi ne, %46, %47 : vector<8x32xi32>
    %49 = arith.select %48, %43, %29 : vector<8x32xi1>, vector<8x32xf32>
    %50 = arith.select %48, %29, %43 : vector<8x32xi1>, vector<8x32xf32>
    %c2_i32 = arith.constant 2 : i32
    %51 = vector.broadcast %c2_i32 : i32 to vector<8x32xi32>
    %52 = arith.andi %44, %51 : vector<8x32xi32>
    %c30_i32 = arith.constant 30 : i32
    %53 = vector.broadcast %c30_i32 : i32 to vector<8x32xi32>
    %54 = arith.shli %52, %53 : vector<8x32xi32>
    %c1_i32_15 = arith.constant 1 : i32
    %55 = vector.broadcast %c1_i32_15 : i32 to vector<8x32xi32>
    %56 = arith.addi %44, %55 : vector<8x32xi32>
    %c2_i32_16 = arith.constant 2 : i32
    %57 = vector.broadcast %c2_i32_16 : i32 to vector<8x32xi32>
    %58 = arith.andi %56, %57 : vector<8x32xi32>
    %c30_i32_17 = arith.constant 30 : i32
    %59 = vector.broadcast %c30_i32_17 : i32 to vector<8x32xi32>
    %60 = arith.shli %58, %59 : vector<8x32xi32>
    %61 = tpu.bitcast %49 : vector<8x32xf32> -> vector<8x32xi32>
    %62 = arith.xori %61, %54 : vector<8x32xi32>
    %63 = tpu.bitcast %62 : vector<8x32xi32> -> vector<8x32xf32>
    %64 = tpu.bitcast %50 : vector<8x32xf32> -> vector<8x32xi32>
    %65 = arith.xori %64, %60 : vector<8x32xi32>
    %66 = tpu.bitcast %65 : vector<8x32xi32> -> vector<8x32xf32>
    %67 = tpu.iota {dimensions = array<i32: 1>} : vector<8x32xi32>
    %c16_i32 = arith.constant 16 : i32
    %68 = vector.broadcast %c16_i32 : i32 to vector<8x32xi32>
    %69 = arith.cmpi slt, %67, %68 : vector<8x32xi32>
    %70 = arith.select %69, %63, %66 : vector<8x32xi1>, vector<8x32xf32>
    %c0_18 = arith.constant 0 : index
    %c0_19 = arith.constant 0 : index
    %71 = vector.load %arg3[%c0_18, %c0_19] : memref<8x32xf32, #tpu.memory_space<vmem>>, vector<8x32xf32>
    tpu.vector_store %arg3[%c0_18, %c0_19], %70 {strides = array<i32>} : memref<8x32xf32, #tpu.memory_space<vmem>>, vector<8x32xf32>,
    return
  }
  func.func @transform_0(%arg0: i32) -> (i32, i32) {
    %c0_i32 = arith.constant 0 : i32
    %c0_i32_0 = arith.constant 0 : i32
    %c0_i32_1 = arith.constant 0 : i32
    return %c0_i32, %c0_i32_0 : i32, i32
  }
  func.func @transform_1(%arg0: i32) -> (i32, i32) {
    %c0_i32 = arith.constant 0 : i32
    %c0_i32_0 = arith.constant 0 : i32
    return %arg0, %c0_i32 : i32, i32
  }
  func.func @transform_2(%arg0: i32) -> (i32, i32) {
    %c0_i32 = arith.constant 0 : i32
    %c0_i32_0 = arith.constant 0 : i32
    return %arg0, %c0_i32 : i32, i32
  }
}

</mosaic_0001>

<bundles_post_ra>
// kernel: tpu_custom_call.1
= control target key start
LH: loop header
LB: loop body
LE: loop exit
PB: predicated region body
PF: predicated region fallthrough
CT: control target
= control target key end

     0   :  { %s153_s0 = inlined_call_operand.vmem [shape: f32[1,32], index: 0, kind: input, shape index: {}]   ;;  %s154_s1 = inlined_call_operand.vmem [shape: f32[8,1], index: 1, kind: input, shape index: {}]   ;;  %s155_s2 = inlined_call_operand.hbm [shape: f32[8,32], index: 2, kind: output, shape index: {}]  }
   0x1   :  { %v12_v0 = vld [vmem:[%s154_s1] sm:$0xff] }
   0x2   :  { %7 = vsyncpa [#allocation3], 0  ;;  %v118_v1 = vmov 0   ;;  %v88_v2 = vld [vmem:[%s153_s0] ss:$0 sm:$0xff]  ;;  %v68_v25 = vlaneseq  ;;  %s119_s0 = smov [#allocation2]  }
   0x3   :  { %93 = vset.pattern.permute.xlu0 %v118_v1  ;;  %s80_s1 = sshll.u32 %s119_s0, 4  ;;  %vm72_vm2 = vcmask 261120   ;;  %s81_s1 = int_to_ptr.vmem [resolvable:$true] %s80_s1 }
   0x4   :  { %16 = vperm.xlu0 %93, %v12_v0   ;;  %v69_v36 = vand.u32 127, %v68_v25  ;;  %s94_s13 = scalar_lea.vmem %s81_s1, 128  ;;  %p99_p1 = scmp.lt.s32.totalorder %s81_s1, %s81_s1 }
   0x5   :  { %p95_p0 = scmp.ne.s32.totalorder %s81_s1, %s94_s13  ;;  %p100_p2 = scmp.lt.s32.totalorder %s94_s13, %s94_s13 }
   0x6   :  { %vm70_vm1 = vcmp.lt.s32.totalorder %v69_v36, 16 }
   0x7   :  { %p101_p3 = por %p100_p2, %p99_p1 }
   0x9   :  { %p102_p4 = pnand %p101_p3, %p95_p0 }
  0x83   :  { %v17_v3 = vpop.permute.xlu0 %16 }
  0x84   :  { %v25_v4 = vmul.f32 %v88_v2, %v17_v3 }
  0x86   :  { %v26_v5 = vmul.f32 0.63661975, %v25_v4 }
  0x88   :  { %v27_v6 = vadd.f32 0.5, %v26_v5 }
  0x8a   :  { %v28_v7 = vfloor.f32 %v27_v6 }
  0x8c   :  { %v29_v8 = vmul.f32 1.5703125, %v28_v7  ;;  %v31_v10 = vmul.f32 0.0004837513, %v28_v7  ;;  %v33_v12 = vmul.f32 7.54979e-08, %v28_v7  ;;  %v89_v14 = vtrunc.f32 %v28_v7 }
  0x8e   :  { %v30_v9 = vsub.f32 %v25_v4, %v29_v8  ;;  %v90_v17 = vcvt.f32.s32 %v89_v14 }
  0x90   :  { %v32_v11 = vsub.f32 %v30_v9, %v31_v10  ;;  %v59_v22 = vadd.s32 1, %v90_v17  ;;  %v53_v31 = vand.u32 1, %v90_v17  ;;  %v57_v32 = vand.u32 2, %v90_v17 }
  0x92   :  { %v34_v13 = vsub.f32 %v32_v11, %v33_v12  ;;  %v60_v33 = vand.u32 2, %v59_v22  ;;  %vm54_vm0 = vcmp.ne.s32.totalorder %v53_v31, 0  ;;  %v58_v39 = vshll.u32 %v57_v32, 30 }
  0x94   :  { %v35_v15 = vmul.f32 %v34_v13, %v34_v13  ;;  %v61_v40 = vshll.u32 %v60_v33, 30 }
  0x96   :  { %v37_v16 = vmul.f32 -0.00019515296, %v35_v15  ;;  %v46_v18 = vmul.f32 2.4433157e-05, %v35_v15  ;;  %v43_v23 = vmul.f32 0.5, %v35_v15  ;;  %v36_v26 = vmul.f32 %v35_v15, %v34_v13 }
  0x97   :  { %v45_v28 = vmul.f32 %v35_v15, %v35_v15 }
  0x98   :  { %v38_v19 = vadd.f32 0.008332161, %v37_v16  ;;  %v47_v20 = vadd.f32 -0.0013887316, %v46_v18  ;;  %v44_v34 = vsub.f32 1.0, %v43_v23 }
  0x9a   :  { %v39_v21 = vmul.f32 %v38_v19, %v35_v15  ;;  %v48_v24 = vmul.f32 %v47_v20, %v35_v15 }
  0x9c   :  { %v40_v27 = vadd.f32 -0.16666655, %v39_v21  ;;  %v49_v29 = vadd.f32 0.041666646, %v48_v24 }
  0x9e   :  { %v41_v30 = vmul.f32 %v40_v27, %v36_v26  ;;  %v50_v35 = vmul.f32 %v49_v29, %v45_v28 }
  0xa0   :  { %v42_v37 = vadd.f32 %v41_v30, %v34_v13  ;;  %v51_v38 = vadd.f32 %v50_v35, %v44_v34 }
  0xa2   :  { %v55_v41 = vsel %vm54_vm0, %v51_v38, %v42_v37  ;;  %v56_v42 = vsel %vm54_vm0, %v42_v37, %v51_v38 }
  0xa3   :  { %v63_v43 = vxor.u32 %v58_v39, %v55_v41  ;;  %v66_v44 = vxor.u32 %v61_v40, %v56_v42 }
  0xa5   :  { %v71_v45 = vsel %vm70_vm1, %v63_v43, %v66_v44 }
  0xa6   :  { %73 = vst.msk [vmem:[#allocation2] sm:$0xff] %vm72_vm2, %v71_v45 }
  0xa7   :  { %105 = shalt.err (!%p102_p4)
}
  0xa8   :  { %s106_s16 = scalar_lea.hbm %s155_s2, 128 }
  0xa9   :  { %p107_p5 = scmp.ne.s32.totalorder %s155_s2, %s106_s16  ;;  %p110_p6 = scmp.lt.u32.totalorder %s106_s16, %s155_s2 }
  0xab   :  { %p112_p7 = pnand %p110_p6, %p107_p5 }
  0xad   :  { %115 = shalt.err (!%p112_p7)
}
  0xae   :  { %83 = dma.vmem_to_hbm [thread:$0]  %s81_s1, 128, %s155_s2, [#allocation3]  }
  0xaf   :  { %116 = dma.done.wait [#allocation3], 128  }
  0xb0   :  { %117 = vsyncadd [#allocation3], 4294967168 }
  0xb1   :  { %87 = vsyncpa [#allocation3], 1 }

</bundles_post_ra>
